<compile_context>
chip_gen: v6e
topology: v6e:2x2x1
jax: 0.10.0
libtpu: 0.0.40
codegen_flags: <defaults>
</compile_context>

<pallas_src>
import jax
import jax.numpy as jnp
from jax.experimental import pallas as pl
from jax.experimental.pallas import tpu as pltpu


def classifier_kernel(x_ref, w1_ref, b1_ref, w2_ref, b2_ref, o_ref, acc_ref):
    j = pl.program_id(1)  # hidden-dim tile index (reduction axis for fc2)

    @pl.when(j == 0)
    def _init():
        # Fold the fc2 bias into the accumulator init (added exactly once).
        acc_ref[...] = jnp.broadcast_to(
            b2_ref[...].astype(jnp.float32), acc_ref.shape)

    # fc1 partial: this hidden tile's columns of w1.
    # Native-dtype operands, f32 accumulation on the MXU.
    h = jnp.dot(x_ref[...], w1_ref[...], preferred_element_type=jnp.float32)
    h = h + b1_ref[...].astype(jnp.float32)

    # Exact (erf-based) GELU — matches torch.nn.GELU() default.
    h = 0.5 * h * (1.0 + jax.lax.erf(h * 0.7071067811865476))

    # fc2 partial contribution of this hidden tile, accumulated in f32.
    acc_ref[...] += jnp.dot(h.astype(w2_ref.dtype), w2_ref[...],
                            preferred_element_type=jnp.float32)

    @pl.when(j == pl.num_programs(1) - 1)
    def _finalize():
        o_ref[...] = acc_ref[...].astype(o_ref.dtype)


def _nbytes(shape, dtype):
    n = 1
    for s in shape:
        n *= int(s)
    return n * jnp.dtype(dtype).itemsize


def _pick_block_b(B, cap=512):
    # Largest divisor of B that is <= cap and keeps the (8,128) rule happy
    # (multiple of 8, or the full batch).
    for cand in range(min(B, cap), 0, -1):
        if B % cand == 0 and (cand % 8 == 0 or cand == B):
            return cand
    return B


def _pick_block_h(D, cap=512):
    # Hidden-dim tile: must be a multiple of 128 (or the full D).
    if D % 128 != 0:
        return D
    for cand in range(min(D, cap), 0, -128):
        if D % cand == 0:
            return cand
    return D


def classifier_forward(x, w1, b1, w2, b2, *, block_b=None, block_h=None):
    """x: (B, D); w1: (D, D); b1: (1, D); w2: (D, C); b2: (1, C) -> (B, C)."""
    B, D = x.shape
    assert w1.shape == (D, D) and b1.shape == (1, D)
    C = w2.shape[1]
    assert w2.shape == (D, C) and b2.shape == (1, C)

    if block_b is None:
        block_b = _pick_block_b(B)
    if block_h is None:
        block_h = _pick_block_h(D)
    assert B % block_b == 0 and D % block_h == 0

    # Lane-pad the classifier output dimension to a multiple of 128.
    C_pad = max(128, ((C + 127) // 128) * 128)
    if C_pad != C:
        w2p = jnp.pad(w2, ((0, 0), (0, C_pad - C)))
        b2p = jnp.pad(b2, ((0, 0), (0, C_pad - C)))
    else:
        w2p, b2p = w2, b2

    # Size the scoped VMEM limit from the actual (double-buffered) tiles.
    tile_bytes = (
        _nbytes((block_b, D), x.dtype)
        + _nbytes((D, block_h), w1.dtype)
        + _nbytes((1, block_h), b1.dtype)
        + _nbytes((block_h, C_pad), w2p.dtype)
        + _nbytes((1, C_pad), b2p.dtype)
        + _nbytes((block_b, C_pad), x.dtype)
    )
    acc_bytes = _nbytes((block_b, C_pad), jnp.float32)
    vmem_limit = 2 * tile_bytes + acc_bytes + (1 << 20)
    vmem_limit = max(vmem_limit, 32 * 1024 * 1024)
    vmem_limit = min(vmem_limit, 64 * 1024 * 1024)  # <= v7x physical VMEM

    grid = (B // block_b, D // block_h)

    out_padded = pl.pallas_call(
        classifier_kernel,
        out_shape=jax.ShapeDtypeStruct((B, C_pad), x.dtype),
        grid_spec=pltpu.PrefetchScalarGridSpec(
            num_scalar_prefetch=0,
            grid=grid,
            in_specs=[
                pl.BlockSpec((block_b, D), lambda i, j: (i, 0)),        # x
                pl.BlockSpec((D, block_h), lambda i, j: (0, j)),        # w1 strip
                pl.BlockSpec((1, block_h), lambda i, j: (0, j)),        # b1 strip
                pl.BlockSpec((block_h, C_pad), lambda i, j: (j, 0)),    # w2 strip
                pl.BlockSpec((1, C_pad), lambda i, j: (0, 0)),          # b2 (const)
            ],
            out_specs=pl.BlockSpec((block_b, C_pad), lambda i, j: (i, 0)),
            scratch_shapes=[pltpu.VMEM((block_b, C_pad), jnp.float32)],
        ),
        compiler_params=pltpu.CompilerParams(
            dimension_semantics=("parallel", "arbitrary"),
            vmem_limit_bytes=int(vmem_limit),
        ),
    )(x, w1, b1, w2p, b2p)

    return out_padded[:, :C]


def reference_forward(x, w1, b1, w2, b2):
    h = x.astype(jnp.float32) @ w1.astype(jnp.float32) + b1
    h = jax.nn.gelu(h, approximate=False)
    return h @ w2.astype(jnp.float32) + b2


if __name__ == "__main__":
    # Small shapes consistent with the module: dim=32, step=1, num_class=7.
    dim, step, num_class = 32, 1, 7
    D = dim * step
    B = 8

    key = jax.random.PRNGKey(0)
    kx, kw1, kb1, kw2, kb2 = jax.random.split(key, 5)

    x = jax.random.normal(kx, (B, D), dtype=jnp.float32)
    # Deterministic synthetic parameters (Linear-like scaling).
    w1 = jax.random.normal(kw1, (D, D), dtype=jnp.float32) * (1.0 / jnp.sqrt(D))
    b1 = jax.random.normal(kb1, (1, D), dtype=jnp.float32) * 0.01
    w2 = jax.random.normal(kw2, (D, num_class), dtype=jnp.float32) * (1.0 / jnp.sqrt(D))
    b2 = jax.random.normal(kb2, (1, num_class), dtype=jnp.float32) * 0.01

    out = classifier_forward(x, w1, b1, w2, b2)
    out = jax.block_until_ready(out)

    ref = reference_forward(x, w1, b1, w2, b2)
    assert out.shape == (B, num_class)
    assert jnp.allclose(out, ref, atol=1e-4, rtol=1e-4)

    print("KERNEL_OK")
</pallas_src>

<mosaic_0001>
module attributes {stable_mosaic.version = 11 : i64} {
  func.func @classifier_kernel(%arg0: i32, %arg1: i32, %arg2: memref<8x32xf32, #tpu.memory_space<vmem>>, %arg3: memref<32x32xf32, #tpu.memory_space<vmem>>, %arg4: memref<1x32xf32, #tpu.memory_space<vmem>>, %arg5: memref<32x128xf32, #tpu.memory_space<vmem>>, %arg6: memref<1x128xf32, #tpu.memory_space<vmem>>, %arg7: memref<8x128xf32, #tpu.memory_space<vmem>>, %arg8: memref<8x128xf32, #tpu.memory_space<vmem>>) attributes {dimension_semantics = [#tpu.dimension_semantics<parallel>, #tpu.dimension_semantics<arbitrary>], iteration_bounds = array<i64: 1, 1>, scalar_prefetch = 0 : i64, scratch_operands = 1 : i64, tpu.core_type = #tpu.core_type<tc>, window_params = [{transform_indices = @transform_0, window_bounds = array<i64: 8, 32>}, {transform_indices = @transform_1, window_bounds = array<i64: 32, 32>}, {transform_indices = @transform_2, window_bounds = array<i64: 1, 32>}, {transform_indices = @transform_3, window_bounds = array<i64: 32, 128>}, {pipeline_mode = #tpu.pipeline_mode<synchronous>, transform_indices = @transform_4, window_bounds = array<i64: 1, 128>}, {transform_indices = @transform_5, window_bounds = array<i64: 8, 128>}]} {
    %c0_i32 = arith.constant 0 : i32
    %0 = arith.cmpi eq, %arg1, %c0_i32 : i32
    %1 = arith.extui %0 : i1 to i32
    %c0_i32_0 = arith.constant 0 : i32
    %2 = arith.cmpi ne, %1, %c0_i32_0 : i32
    scf.if %2 {
      %c0_18 = arith.constant 0 : index
      %c0_19 = arith.constant 0 : index
      %25 = vector.load %arg6[%c0_18, %c0_19] : memref<1x128xf32, #tpu.memory_space<vmem>>, vector<1x128xf32>
      %26 = vector.shape_cast %25 : vector<1x128xf32> to vector<1x128xf32>
      %27 = vector.broadcast %26 : vector<1x128xf32> to vector<8x128xf32>
      %c0_20 = arith.constant 0 : index
      %c0_21 = arith.constant 0 : index
      %28 = vector.load %arg8[%c0_20, %c0_21] : memref<8x128xf32, #tpu.memory_space<vmem>>, vector<8x128xf32>
      tpu.vector_store %arg8[%c0_20, %c0_21], %27 {strides = array<i32>} : memref<8x128xf32, #tpu.memory_space<vmem>>, vector<8x128xf32>,
    } else {
    }
    %c0 = arith.constant 0 : index
    %c0_1 = arith.constant 0 : index
    %3 = vector.load %arg2[%c0, %c0_1] : memref<8x32xf32, #tpu.memory_space<vmem>>, vector<8x32xf32>
    %c0_2 = arith.constant 0 : index
    %c0_3 = arith.constant 0 : index
    %4 = vector.load %arg3[%c0_2, %c0_3] : memref<32x32xf32, #tpu.memory_space<vmem>>, vector<32x32xf32>
    %cst = arith.constant dense<0.000000e+00> : vector<8x32xf32>
    %5 = tpu.matmul %3, %4, %cst {dimension_numbers = #tpu.dot_dimension_numbers<[1], [0], [0], [1], [0, 0, 1, 1], [], []>} : vector<8x32xf32>, vector<32x32xf32>, vector<8x32xf32> -> vector<8x32xf32>
    %c0_4 = arith.constant 0 : index
    %c0_5 = arith.constant 0 : index
    %6 = vector.load %arg4[%c0_4, %c0_5] : memref<1x32xf32, #tpu.memory_space<vmem>>, vector<1x32xf32>
    %7 = vector.broadcast %6 : vector<1x32xf32> to vector<8x32xf32>
    %8 = arith.addf %5, %7 : vector<8x32xf32>
    %cst_6 = arith.constant 5.000000e-01 : f32
    %9 = vector.broadcast %cst_6 : f32 to vector<8x32xf32>
    %10 = arith.mulf %9, %8 : vector<8x32xf32>
    %cst_7 = arith.constant 0.707106769 : f32
    %11 = vector.broadcast %cst_7 : f32 to vector<8x32xf32>
    %12 = arith.mulf %8, %11 : vector<8x32xf32>
    %13 = math.erf %12 : vector<8x32xf32>
    %cst_8 = arith.constant 1.000000e+00 : f32
    %14 = vector.broadcast %cst_8 : f32 to vector<8x32xf32>
    %15 = arith.addf %14, %13 : vector<8x32xf32>
    %16 = arith.mulf %10, %15 : vector<8x32xf32>
    %c0_9 = arith.constant 0 : index
    %c0_10 = arith.constant 0 : index
    %17 = vector.load %arg8[%c0_9, %c0_10] : memref<8x128xf32, #tpu.memory_space<vmem>>, vector<8x128xf32>
    %c0_11 = arith.constant 0 : index
    %c0_12 = arith.constant 0 : index
    %18 = vector.load %arg5[%c0_11, %c0_12] : memref<32x128xf32, #tpu.memory_space<vmem>>, vector<32x128xf32>
    %cst_13 = arith.constant dense<0.000000e+00> : vector<8x128xf32>
    %19 = tpu.matmul %16, %18, %cst_13 {dimension_numbers = #tpu.dot_dimension_numbers<[1], [0], [0], [1], [0, 0, 1, 1], [], []>} : vector<8x32xf32>, vector<32x128xf32>, vector<8x128xf32> -> vector<8x128xf32>
    %20 = arith.addf %17, %19 : vector<8x128xf32>
    %c0_14 = arith.constant 0 : index
    %c0_15 = arith.constant 0 : index
    %21 = vector.load %arg8[%c0_14, %c0_15] : memref<8x128xf32, #tpu.memory_space<vmem>>, vector<8x128xf32>
    tpu.vector_store %arg8[%c0_14, %c0_15], %20 {strides = array<i32>} : memref<8x128xf32, #tpu.memory_space<vmem>>, vector<8x128xf32>,
    %c0_i32_16 = arith.constant 0 : i32
    %22 = arith.cmpi eq, %arg1, %c0_i32_16 : i32
    %23 = arith.extui %22 : i1 to i32
    %c0_i32_17 = arith.constant 0 : i32
    %24 = arith.cmpi ne, %23, %c0_i32_17 : i32
    scf.if %24 {
      %c0_18 = arith.constant 0 : index
      %c0_19 = arith.constant 0 : index
      %25 = vector.load %arg8[%c0_18, %c0_19] : memref<8x128xf32, #tpu.memory_space<vmem>>, vector<8x128xf32>
      %c0_20 = arith.constant 0 : index
      %c0_21 = arith.constant 0 : index
      %26 = vector.load %arg7[%c0_20, %c0_21] : memref<8x128xf32, #tpu.memory_space<vmem>>, vector<8x128xf32>
      tpu.vector_store %arg7[%c0_20, %c0_21], %25 {strides = array<i32>} : memref<8x128xf32, #tpu.memory_space<vmem>>, vector<8x128xf32>,
    } else {
    }
    return
  }
  func.func @transform_0(%arg0: i32, %arg1: i32) -> (i32, i32) {
    %c0_i32 = arith.constant 0 : i32
    %c0_i32_0 = arith.constant 0 : i32
    return %arg0, %c0_i32 : i32, i32
  }
  func.func @transform_1(%arg0: i32, %arg1: i32) -> (i32, i32) {
    %c0_i32 = arith.constant 0 : i32
    %c0_i32_0 = arith.constant 0 : i32
    return %c0_i32, %arg1 : i32, i32
  }
  func.func @transform_2(%arg0: i32, %arg1: i32) -> (i32, i32) {
    %c0_i32 = arith.constant 0 : i32
    %c0_i32_0 = arith.constant 0 : i32
    return %c0_i32, %arg1 : i32, i32
  }
  func.func @transform_3(%arg0: i32, %arg1: i32) -> (i32, i32) {
    %c0_i32 = arith.constant 0 : i32
    %c0_i32_0 = arith.constant 0 : i32
    return %arg1, %c0_i32 : i32, i32
  }
  func.func @transform_4(%arg0: i32, %arg1: i32) -> (i32, i32) {
    %c0_i32 = arith.constant 0 : i32
    %c0_i32_0 = arith.constant 0 : i32
    %c0_i32_1 = arith.constant 0 : i32
    return %c0_i32, %c0_i32_0 : i32, i32
  }
  func.func @transform_5(%arg0: i32, %arg1: i32) -> (i32, i32) {
    %c0_i32 = arith.constant 0 : i32
    %c0_i32_0 = arith.constant 0 : i32
    return %arg0, %c0_i32 : i32, i32
  }
}

</mosaic_0001>

<bundles_post_ra>
// kernel: tpu_custom_call.1
= control target key start
LH: loop header
LB: loop body
LE: loop exit
PB: predicated region body
PF: predicated region fallthrough
CT: control target
= control target key end

     0   :  { %10 = vsyncpa [#allocation4], 0  ;;  %s454_s0 = inlined_call_operand.hbm [shape: f32[8,32], index: 0, kind: input, shape index: {}]   ;;  %s455_s1 = inlined_call_operand.hbm [shape: f32[32,32], index: 1, kind: input, shape index: {}]   ;;  %s456_s2 = inlined_call_operand.vmem [shape: f32[1,32], index: 2, kind: input, shape index: {}]   ;;  %s457_s3 = inlined_call_operand.hbm [shape: f32[32,128], index: 3, kind: input, shape index: {}]   ;;  %s458_s4 = inlined_call_operand.vmem [shape: f32[1,128], index: 4, kind: input, shape index: {}]   ;;  %s459_s5 = inlined_call_operand.hbm [shape: f32[8,128], index: 5, kind: output, shape index: {}]  }
   0x1   :  { %11 = vsyncpa [#allocation7], 0 }
   0x2   :  { %12 = vsyncpa [#allocation5], 0  ;;  %s396_s18 = smov [#allocation6]  }
   0x3   :  { %s28_s19 = sshll.u32 %s396_s18, 4  ;;  %s29_s19 = int_to_ptr.vmem [resolvable:$true] %s28_s19 }
   0x4   :  { %s318_s20 = scalar_lea.vmem %s29_s19, 512  ;;  %p323_p1 = scmp.lt.s32.totalorder %s29_s19, %s29_s19 }
   0x5   :  { %p319_p0 = scmp.ne.s32.totalorder %s29_s19, %s318_s20  ;;  %p324_p2 = scmp.lt.s32.totalorder %s318_s20, %s318_s20 }
   0x7   :  { %p325_p3 = por %p324_p2, %p323_p1 }
   0x9   :  { %p326_p4 = pnand %p325_p3, %p319_p0 }
   0xb   :  { %329 = shalt.err (!%p326_p4)
}
   0xc   :  { %s397_s21 = smov 128   ;;  %s398_s22 = smov 8  }
   0xd   :  { %34 = dma.hbm_to_vmem [thread:$0]  %s455_s1, 512, %s29_s19, [#allocation7], %s397_s21, %s397_s21, %s398_s22  }
   0xe   :  { %s399_s25 = smov [#allocation3]   ;;  %s400_s27 = smov [#allocation8]  }
   0xf   :  { %s19_s26 = sshll.u32 %s399_s25, 4  ;;  %s42_s28 = sshll.u32 %s400_s27, 4  ;;  %s20_s26 = int_to_ptr.vmem [resolvable:$true] %s19_s26  ;;  %s43_s28 = int_to_ptr.vmem [resolvable:$true] %s42_s28 }
  0x10   :  { %s338_s29 = scalar_lea.vmem %s20_s26, 128  ;;  %p343_p6 = scmp.lt.s32.totalorder %s20_s26, %s20_s26 }
  0x11   :  { %p339_p5 = scmp.ne.s32.totalorder %s20_s26, %s338_s29  ;;  %p344_p7 = scmp.lt.s32.totalorder %s338_s29, %s338_s29 }
  0x13   :  { %p345_p8 = por %p344_p7, %p343_p6 }
  0x15   :  { %p346_p9 = pnand %p345_p8, %p339_p5 }
  0x17   :  { %349 = shalt.err (!%p346_p9)
}
  0x18   :  { %22 = dma.hbm_to_vmem [thread:$0]  %s454_s0, 128, %s20_s26, [#allocation4]  }
  0x19   :  { %s358_s7 = scalar_lea.vmem %s43_s28, 512  ;;  %p363_p11 = scmp.lt.s32.totalorder %s43_s28, %s43_s28 }
  0x1a   :  { %p359_p10 = scmp.ne.s32.totalorder %s43_s28, %s358_s7  ;;  %p364_p12 = scmp.lt.s32.totalorder %s358_s7, %s358_s7 }
  0x1c   :  { %p365_p13 = por %p364_p12, %p363_p11 }
  0x1e   :  { %p366_p0 = pnand %p365_p13, %p359_p10 }
  0x20   :  { %369 = shalt.err (!%p366_p0)
}
  0x21   :  { %48 = dma.hbm_to_vmem [thread:$0]  %s457_s3, 512, %s43_s28, [#allocation7], %s397_s21, %s397_s21, %s398_s22  }
  0x22   :  { %390 = dma.done.wait [#allocation4], 128  }
  0x23   :  { %391 = vsyncadd [#allocation4], 4294967168 }
  0x24   :  { %392 = dma.done.wait [#allocation7], 1024  }
  0x25   :  { %393 = vsyncadd [#allocation7], 4294966272  ;;  %v401_v0 = vmov 0.0   ;;  %vm402_vm0 = vmmov 0   ;;  %v76_v1 = vld [vmem:[#allocation6 + $0x18] sm:$0xff]  ;;  %v75_v2 = vld [vmem:[#allocation6 + $0x10] sm:$0xff] }
  0x26   :  { %278 = vmatprep.subr.mxu0 %v401_v0  ;;  %286 = vmatprep.mubr.msk.f32.mxu0 %vm402_vm0, %v401_v0  ;;  %v74_v3 = vld [vmem:[#allocation6 + $0x8] sm:$0xff]  ;;  %v73_v4 = vld [vmem:[#allocation6] sm:$0xff]  ;;  %v72_v5 = vld [vmem:[#allocation3] sm:$0xff]  ;;  %vm84_vm1 = vcmask 261120   ;;  %s403_s11 = smov [#allocation9]  }
  0x27   :  { %289 = vmatprep.subr.mxu1 %v401_v0  ;;  %297 = vmatprep.mubr.msk.f32.mxu1 %vm402_vm0, %v401_v0  ;;  %v167_v6 = vld [vmem:[#allocation8 + $0x18] sm:$0xff]  ;;  %v166_v7 = vld [vmem:[#allocation8 + $0x10] sm:$0xff]  ;;  %v165_v8 = vld [vmem:[#allocation8 + $0x8] sm:$0xff]  ;;  %s254_s12 = sshll.u32 %s403_s11, 4  ;;  %s255_s12 = int_to_ptr.vmem [resolvable:$true] %s254_s12 }
  0x28   :  { %279 = vmatpush3.msra.mxu0 %v76_v1  ;;  %290 = vmatpush3.msra.mxu1 %v167_v6  ;;  %v164_v9 = vld [vmem:[#allocation8] sm:$0xff]  ;;  %v265_v10 = vld [vmem:[%s456_s2] ss:$0 sm:$0xff]  ;;  %s370_s2 = scalar_lea.vmem %s255_s12, 128  ;;  %p375_p2 = scmp.lt.s32.totalorder %s255_s12, %s255_s12 }
  0x29   :  { %280 = vmatprep.subr.mxu0 %v401_v0  ;;  %291 = vmatprep.subr.mxu1 %v401_v0  ;;  %v264_v19 = vld [vmem:[%s458_s4] ss:$0 sm:$0xff]  ;;  %p371_p1 = scmp.ne.s32.totalorder %s255_s12, %s370_s2  ;;  %p376_p3 = scmp.lt.s32.totalorder %s370_s2, %s370_s2 }
  0x2a   :  { %281 = vmatpush3.msra.mxu0 %v75_v2  ;;  %292 = vmatpush3.msra.mxu1 %v166_v7 }
  0x2b   :  { %282 = vmatprep.subr.mxu0 %v401_v0  ;;  %293 = vmatprep.subr.mxu1 %v401_v0  ;;  %p377_p4 = por %p376_p3, %p375_p2 }
  0x2c   :  { %283 = vmatpush3.msra.mxu0 %v74_v3  ;;  %294 = vmatpush3.msra.mxu1 %v165_v8 }
  0x2d   :  { %284 = vmatprep.subr.mxu0 %v401_v0  ;;  %295 = vmatprep.subr.mxu1 %v401_v0  ;;  %p378_p5 = pnand %p377_p4, %p371_p1 }
  0x2e   :  { %285 = vmatpush3.msra.mxu0 %v73_v4  ;;  %296 = vmatpush3.msra.mxu1 %v164_v9 }
  0x2f   :  { %287 = vmatmul.mubr.msk.f32.vlgmr.msra.gmra.mxu0 %vm84_vm1, %v72_v5 }
  0xef   :  { %v154_v11 = vpop.f32.mrf.mxu0 }
  0xf0   :  { %v155_v12 = vadd.f32 %v265_v10, %v154_v11 }
  0xf1   :  { %v288_v13 = vpop.f32.mrf.mxu0 }
  0xf2   :  { %v159_v14 = vmul.f32 0.70710677, %v155_v12  ;;  %v158_v16 = vmul.f32 0.5, %v155_v12 }
  0xf4   :  { %308 = verf.f32 %v159_v14 }
 0x101   :  { %v309_v15 = vpop.eup %308 }
 0x102   :  { %v161_v17 = vadd.f32 1.0, %v309_v15 }
 0x104   :  { %v162_v18 = vmul.f32 %v161_v17, %v158_v16 }
 0x106   :  { %298 = vmatmul.mubr.msk.f32.vlgmr.msra.gmra.mxu1 %vm84_vm1, %v162_v18 }
 0x1c6   :  { %v237_v20 = vpop.f32.mrf.mxu1 }
 0x1c7   :  { %v241_v21 = vadd.f32 %v264_v19, %v237_v20 }
 0x1c8   :  { %v299_v22 = vpop.f32.mrf.mxu1 }
 0x1c9   :  { %247 = vst [vmem:[#allocation9] sm:$0xff] %v241_v21 }
 0x1ca   :  { %381 = shalt.err (!%p378_p5)
}
 0x1cb   :  { %257 = dma.vmem_to_hbm [thread:$0]  %s255_s12, 128, %s459_s5, [#allocation5]  }
 0x1cc   :  { %394 = dma.done.wait [#allocation5], 128  }
 0x1cd   :  { %395 = vsyncadd [#allocation5], 4294967168 }
 0x1ce   :  { %261 = vsyncpa [#allocation4], 1 }
 0x1cf   :  { %262 = vsyncpa [#allocation7], 1 }
 0x1d0   :  { %263 = vsyncpa [#allocation5], 1 }

</bundles_post_ra>
